<compile_context>
chip_gen: v6e
topology: v6e:2x2x1
jax: 0.10.0
libtpu: 0.0.40
codegen_flags: <defaults>
</compile_context>

<pallas_src>
import jax
import jax.numpy as jnp
from jax.experimental import pallas as pl
from jax.experimental.pallas import tpu as pltpu

# ---------------------------------------------------------------------------
# COCO category id remapping (same table as the PyTorch module)
# ---------------------------------------------------------------------------
COCO_CAT_ID_CONVERT = {1: 0, 2: 1, 3: 2, 4: 3, 5: 4, 6: 5, 7: 6, 8: 7, 9: 8, 10: 9,
                       11: 10, 13: 11, 14: 12, 15: 13, 16: 14, 17: 15, 18: 16, 19: 17,
                       20: 18, 21: 19, 22: 20, 23: 21, 24: 22, 25: 23, 27: 24, 28: 25,
                       31: 26, 32: 27, 33: 28, 34: 29, 35: 30, 36: 31, 37: 32, 38: 33,
                       39: 34, 40: 35, 41: 36, 42: 37, 43: 38, 44: 39, 46: 40, 47: 41,
                       48: 42, 49: 43, 50: 44, 51: 45, 52: 46, 53: 47, 54: 48, 55: 49,
                       56: 50, 57: 51, 58: 52, 59: 53, 60: 54, 61: 55, 62: 56, 63: 57,
                       64: 58, 65: 59, 67: 60, 70: 61, 72: 62, 73: 63, 74: 64, 75: 65,
                       76: 66, 77: 67, 78: 68, 79: 69, 80: 70, 81: 71, 82: 72, 84: 73,
                       85: 74, 86: 75, 87: 76, 88: 77, 89: 78, 90: 79}

OUT_H, OUT_W = 224, 224
TILE_H = 56                     # 224 / 56 = 4 output-row tiles (divisible by 8)


# ---------------------------------------------------------------------------
# Test-only reference helper (plain JAX): bilinear resize as a dense matrix
# ---------------------------------------------------------------------------
def _resize_matrix(in_size: int, out_size: int) -> jnp.ndarray:
    """Bilinear resize as a (out_size, in_size) interpolation matrix (cv2 INTER_LINEAR)."""
    scale = in_size / out_size
    dst = jnp.arange(out_size, dtype=jnp.float32)
    src = jnp.clip((dst + 0.5) * scale - 0.5, 0.0, in_size - 1)
    lo = jnp.floor(src).astype(jnp.int32)
    hi = jnp.minimum(lo + 1, in_size - 1)
    frac = src - lo.astype(jnp.float32)
    rows = jnp.arange(out_size)
    w = jnp.zeros((out_size, in_size), jnp.float32)
    w = w.at[rows, lo].add(1.0 - frac)
    w = w.at[rows, hi].add(frac)
    return w


# ---------------------------------------------------------------------------
# Pallas kernel: fused HWC->CHW bilinear resize (weights generated in-kernel)
# ---------------------------------------------------------------------------
def _make_resize_kernel(h_in: int, w_in: int, c: int, tile_h: int):
    scale_y = h_in / OUT_H
    scale_x = w_in / OUT_W
    wc = w_in * c
    cf = float(c)

    def kernel(x_ref, out_ref):
        # x_ref  : (H, W*C)            f32  -- HWC image flattened along its last two dims
        # out_ref: (C, tile_h, OUT_W)  f32  -- CHW output rows for this tile

        # ---- H-resize weights for this output-row tile (VPU only, no HBM weights) ----
        i = pl.program_id(0)
        row0 = (i * tile_h).astype(jnp.float32)
        oh = jax.lax.broadcasted_iota(jnp.int32, (tile_h, h_in), 0).astype(jnp.float32) + row0
        hh = jax.lax.broadcasted_iota(jnp.int32, (tile_h, h_in), 1).astype(jnp.float32)
        src_y = jnp.clip((oh + 0.5) * scale_y - 0.5, 0.0, float(h_in - 1))
        wy = jnp.maximum(0.0, 1.0 - jnp.abs(src_y - hh))              # (tile_h, H)

        # ---- stage 1: H-resize of all channels in ONE matmul (no relayout needed) ----
        t1 = jnp.dot(wy, x_ref[...], preferred_element_type=jnp.float32)   # (tile_h, W*C)

        # ---- W-resize weights, interleave-expanded over the (w, channel) row index ----
        j = jax.lax.broadcasted_iota(jnp.int32, (wc, OUT_W), 0).astype(jnp.float32)
        ow = jax.lax.broadcasted_iota(jnp.int32, (wc, OUT_W), 1).astype(jnp.float32)
        w_idx = jnp.floor(j / cf)            # source column w   (row j = w*C + ch)
        ch = j - w_idx * cf                  # channel of row j  (exact for these ranges)
        src_x = jnp.clip((ow + 0.5) * scale_x - 0.5, 0.0, float(w_in - 1))
        base = jnp.maximum(0.0, 1.0 - jnp.abs(src_x - w_idx))         # (W*C, OUT_W)

        # ---- stage 2: one matmul per channel, writing CHW output directly ----
        for cc in range(c):                  # C is small & static -> unrolled
            bc = jnp.where(ch == float(cc), base, 0.0)
            out_ref[cc] = jnp.dot(t1, bc, preferred_element_type=jnp.float32)

    return kernel


# ---------------------------------------------------------------------------
# Wrapper (the "forward" of TransformsCOCO, valid-transform branch)
# ---------------------------------------------------------------------------
def transforms_coco_forward(image_hwc, boxes_xywh, category_ids):
    """image_hwc: (H, W, C) image; boxes_xywh: (N, 4) float COCO boxes;
    category_ids: (N,) raw COCO category ids.
    Returns (image_chw_224, {'boxes': (N, 4) f32 xyxy, 'labels': (N,) int})."""
    H, W, C = image_hwc.shape
    # Free reshape of the HWC buffer -- the HWC->CHW untangle happens inside the kernel.
    img_flat = image_hwc.astype(jnp.float32).reshape(H, W * C)

    resized = pl.pallas_call(
        _make_resize_kernel(H, W, C, TILE_H),
        out_shape=jax.ShapeDtypeStruct((C, OUT_H, OUT_W), jnp.float32),
        grid=(OUT_H // TILE_H,),
        in_specs=[
            # Full image as one resident block (same block index every step -> fetched once).
            pl.BlockSpec((H, W * C), lambda i: (0, 0)),
        ],
        out_specs=pl.BlockSpec((C, TILE_H, OUT_W), lambda i: (0, i, 0)),
        compiler_params=pltpu.CompilerParams(
            dimension_semantics=("parallel",),
            vmem_limit_bytes=48 * 1024 * 1024,
        ),
        # TODO(synk): for very large source frames also tile the input H band; for
        #             dataset use, add a leading batch grid axis for cross-image overlap.
    )(img_flat)

    # ---- boxes: xywh -> xyxy + Resize rescale, plain JAX (fused by XLA, no kernel) ----
    sx = float(OUT_W) / float(W)
    sy = float(OUT_H) / float(H)
    b = boxes_xywh.astype(jnp.float32)
    xyxy = jnp.concatenate([b[:, :2], b[:, :2] + b[:, 2:]], axis=-1)
    boxes_out = xyxy * jnp.array([sx, sy, sx, sy], jnp.float32)

    # ---- labels: dense LUT over raw COCO ids (unknown ids map to -1) ----
    keys = jnp.array(list(COCO_CAT_ID_CONVERT.keys()), jnp.int32)
    vals = jnp.array(list(COCO_CAT_ID_CONVERT.values()), jnp.int32)
    lut = jnp.full((91,), -1, dtype=jnp.int32).at[keys].set(vals)
    labels = lut[category_ids.astype(jnp.int32)]
    # torch.int64 equivalent; TPU JAX defaults to int32 — widen only if x64 enabled
    if jax.config.read("jax_enable_x64"):
        labels = labels.astype(jnp.int64)

    return resized, {"boxes": boxes_out, "labels": labels}


if __name__ == "__main__":
    key = jax.random.PRNGKey(0)
    k_img, k_xy, k_wh, k_cat = jax.random.split(key, 4)

    H, W, C, N = 16, 16, 3, 8
    image = jax.random.uniform(k_img, (H, W, C), jnp.float32, 0.0, 255.0)
    xy = jax.random.uniform(k_xy, (N, 2), jnp.float32, 0.0, 8.0)
    wh = jax.random.uniform(k_wh, (N, 2), jnp.float32, 1.0, 7.0)
    boxes = jnp.concatenate([xy, wh], axis=-1)                       # COCO xywh
    valid_ids = jnp.array(sorted(COCO_CAT_ID_CONVERT.keys()), jnp.int32)
    cat_ids = valid_ids[jax.random.randint(k_cat, (N,), 0, valid_ids.shape[0])]

    img_out, target = transforms_coco_forward(image, boxes, cat_ids)
    jax.block_until_ready((img_out, target["boxes"], target["labels"]))

    # ---- sanity checks against a plain-JAX reference ----
    wy = _resize_matrix(H, OUT_H)
    wx = _resize_matrix(W, OUT_W)
    ref_img = jnp.einsum("oh,hwc,xw->cox", wy, image, wx)
    assert img_out.shape == (C, OUT_H, OUT_W)
    assert jnp.allclose(img_out, ref_img, atol=1e-3, rtol=1e-4)

    ref_boxes = jnp.stack([boxes[:, 0] * (OUT_W / W),
                           boxes[:, 1] * (OUT_H / H),
                           (boxes[:, 0] + boxes[:, 2]) * (OUT_W / W),
                           (boxes[:, 1] + boxes[:, 3]) * (OUT_H / H)], axis=-1)
    assert jnp.allclose(target["boxes"], ref_boxes, atol=1e-4)
    assert target["labels"].shape == (N,)
    assert bool(jnp.all(target["labels"] >= 0))

    print("KERNEL_OK")
</pallas_src>

<mosaic_0001>
module attributes {stable_mosaic.version = 11 : i64} {
  func.func @kernel(%arg0: i32, %arg1: memref<16x48xf32, #tpu.memory_space<vmem>>, %arg2: memref<3x56x224xf32, #tpu.memory_space<vmem>>) attributes {dimension_semantics = [#tpu.dimension_semantics<parallel>], iteration_bounds = array<i64: 4>, scalar_prefetch = 0 : i64, scratch_operands = 0 : i64, tpu.core_type = #tpu.core_type<tc>, window_params = [{pipeline_mode = #tpu.pipeline_mode<synchronous>, transform_indices = @transform_0, window_bounds = array<i64: 16, 48>}, {transform_indices = @transform_1, window_bounds = array<i64: 3, 56, 224>}]} {
    %c56_i32 = arith.constant 56 : i32
    %0 = arith.muli %arg0, %c56_i32 : i32
    %1 = arith.sitofp %0 : i32 to f32
    %2 = tpu.iota {dimensions = array<i32: 0>} : vector<56x16xi32>
    %3 = arith.sitofp %2 : vector<56x16xi32> to vector<56x16xf32>
    %4 = vector.broadcast %1 : f32 to vector<56x16xf32>
    %5 = arith.addf %3, %4 : vector<56x16xf32>
    %6 = tpu.iota {dimensions = array<i32: 1>} : vector<56x16xi32>
    %7 = arith.sitofp %6 : vector<56x16xi32> to vector<56x16xf32>
    %cst = arith.constant 5.000000e-01 : f32
    %8 = vector.broadcast %cst : f32 to vector<56x16xf32>
    %9 = arith.addf %5, %8 : vector<56x16xf32>
    %cst_0 = arith.constant 0.0714285746 : f32
    %10 = vector.broadcast %cst_0 : f32 to vector<56x16xf32>
    %11 = arith.mulf %9, %10 : vector<56x16xf32>
    %cst_1 = arith.constant 5.000000e-01 : f32
    %12 = vector.broadcast %cst_1 : f32 to vector<56x16xf32>
    %13 = arith.subf %11, %12 : vector<56x16xf32>
    %cst_2 = arith.constant 0.000000e+00 : f32
    %cst_3 = arith.constant 1.500000e+01 : f32
    %14 = vector.broadcast %cst_2 : f32 to vector<56x16xf32>
    %15 = arith.maximumf %14, %13 : vector<56x16xf32>
    %16 = vector.broadcast %cst_3 : f32 to vector<56x16xf32>
    %17 = arith.minimumf %16, %15 : vector<56x16xf32>
    %18 = arith.subf %17, %7 : vector<56x16xf32>
    %19 = math.absf %18 : vector<56x16xf32>
    %cst_4 = arith.constant 1.000000e+00 : f32
    %20 = vector.broadcast %cst_4 : f32 to vector<56x16xf32>
    %21 = arith.subf %20, %19 : vector<56x16xf32>
    %cst_5 = arith.constant 0.000000e+00 : f32
    %22 = vector.broadcast %cst_5 : f32 to vector<56x16xf32>
    %23 = arith.maximumf %22, %21 : vector<56x16xf32>
    %c0 = arith.constant 0 : index
    %c0_6 = arith.constant 0 : index
    %24 = vector.load %arg1[%c0, %c0_6] : memref<16x48xf32, #tpu.memory_space<vmem>>, vector<16x48xf32>
    %cst_7 = arith.constant dense<0.000000e+00> : vector<56x48xf32>
    %25 = tpu.matmul %23, %24, %cst_7 {dimension_numbers = #tpu.dot_dimension_numbers<[1], [0], [0], [1], [0, 0, 1, 1], [], []>} : vector<56x16xf32>, vector<16x48xf32>, vector<56x48xf32> -> vector<56x48xf32>
    %26 = tpu.iota {dimensions = array<i32: 0>} : vector<48x224xi32>
    %27 = arith.sitofp %26 : vector<48x224xi32> to vector<48x224xf32>
    %28 = tpu.iota {dimensions = array<i32: 1>} : vector<48x224xi32>
    %29 = arith.sitofp %28 : vector<48x224xi32> to vector<48x224xf32>
    %cst_8 = arith.constant 3.000000e+00 : f32
    %30 = vector.broadcast %cst_8 : f32 to vector<48x224xf32>
    %31 = arith.divf %27, %30 : vector<48x224xf32>
    %32 = math.floor %31 : vector<48x224xf32>
    %cst_9 = arith.constant 3.000000e+00 : f32
    %33 = vector.broadcast %cst_9 : f32 to vector<48x224xf32>
    %34 = arith.mulf %32, %33 : vector<48x224xf32>
    %35 = arith.subf %27, %34 : vector<48x224xf32>
    %cst_10 = arith.constant 5.000000e-01 : f32
    %36 = vector.broadcast %cst_10 : f32 to vector<48x224xf32>
    %37 = arith.addf %29, %36 : vector<48x224xf32>
    %cst_11 = arith.constant 0.0714285746 : f32
    %38 = vector.broadcast %cst_11 : f32 to vector<48x224xf32>
    %39 = arith.mulf %37, %38 : vector<48x224xf32>
    %cst_12 = arith.constant 5.000000e-01 : f32
    %40 = vector.broadcast %cst_12 : f32 to vector<48x224xf32>
    %41 = arith.subf %39, %40 : vector<48x224xf32>
    %cst_13 = arith.constant 0.000000e+00 : f32
    %cst_14 = arith.constant 1.500000e+01 : f32
    %42 = vector.broadcast %cst_13 : f32 to vector<48x224xf32>
    %43 = arith.maximumf %42, %41 : vector<48x224xf32>
    %44 = vector.broadcast %cst_14 : f32 to vector<48x224xf32>
    %45 = arith.minimumf %44, %43 : vector<48x224xf32>
    %46 = arith.subf %45, %32 : vector<48x224xf32>
    %47 = math.absf %46 : vector<48x224xf32>
    %cst_15 = arith.constant 1.000000e+00 : f32
    %48 = vector.broadcast %cst_15 : f32 to vector<48x224xf32>
    %49 = arith.subf %48, %47 : vector<48x224xf32>
    %cst_16 = arith.constant 0.000000e+00 : f32
    %50 = vector.broadcast %cst_16 : f32 to vector<48x224xf32>
    %51 = arith.maximumf %50, %49 : vector<48x224xf32>
    %cst_17 = arith.constant 0.000000e+00 : f32
    %52 = vector.broadcast %cst_17 : f32 to vector<48x224xf32>
    %53 = arith.cmpf oeq, %35, %52 : vector<48x224xf32>
    %cst_18 = arith.constant 0.000000e+00 : f32
    %54 = vector.broadcast %cst_18 : f32 to vector<48x224xf32>
    %55 = arith.select %53, %51, %54 : vector<48x224xi1>, vector<48x224xf32>
    %cst_19 = arith.constant dense<0.000000e+00> : vector<56x224xf32>
    %56 = tpu.matmul %25, %55, %cst_19 {dimension_numbers = #tpu.dot_dimension_numbers<[1], [0], [0], [1], [0, 0, 1, 1], [], []>} : vector<56x48xf32>, vector<48x224xf32>, vector<56x224xf32> -> vector<56x224xf32>
    %c0_20 = arith.constant 0 : index
    %c0_21 = arith.constant 0 : index
    %c0_22 = arith.constant 0 : index
    %57 = vector.load %arg2[%c0_20, %c0_21, %c0_22] : memref<3x56x224xf32, #tpu.memory_space<vmem>>, vector<1x56x224xf32>
    %58 = vector.shape_cast %57 : vector<1x56x224xf32> to vector<56x224xf32>
    %59 = vector.shape_cast %56 : vector<56x224xf32> to vector<1x56x224xf32>
    tpu.vector_store %arg2[%c0_20, %c0_21, %c0_22], %59 {strides = array<i32>} : memref<3x56x224xf32, #tpu.memory_space<vmem>>, vector<1x56x224xf32>,
    %cst_23 = arith.constant 1.000000e+00 : f32
    %60 = vector.broadcast %cst_23 : f32 to vector<48x224xf32>
    %61 = arith.cmpf oeq, %35, %60 : vector<48x224xf32>
    %cst_24 = arith.constant 0.000000e+00 : f32
    %62 = vector.broadcast %cst_24 : f32 to vector<48x224xf32>
    %63 = arith.select %61, %51, %62 : vector<48x224xi1>, vector<48x224xf32>
    %cst_25 = arith.constant dense<0.000000e+00> : vector<56x224xf32>
    %64 = tpu.matmul %25, %63, %cst_25 {dimension_numbers = #tpu.dot_dimension_numbers<[1], [0], [0], [1], [0, 0, 1, 1], [], []>} : vector<56x48xf32>, vector<48x224xf32>, vector<56x224xf32> -> vector<56x224xf32>
    %c1 = arith.constant 1 : index
    %c0_26 = arith.constant 0 : index
    %c0_27 = arith.constant 0 : index
    %65 = vector.load %arg2[%c1, %c0_26, %c0_27] : memref<3x56x224xf32, #tpu.memory_space<vmem>>, vector<1x56x224xf32>
    %66 = vector.shape_cast %65 : vector<1x56x224xf32> to vector<56x224xf32>
    %67 = vector.shape_cast %64 : vector<56x224xf32> to vector<1x56x224xf32>
    tpu.vector_store %arg2[%c1, %c0_26, %c0_27], %67 {strides = array<i32>} : memref<3x56x224xf32, #tpu.memory_space<vmem>>, vector<1x56x224xf32>,
    %cst_28 = arith.constant 2.000000e+00 : f32
    %68 = vector.broadcast %cst_28 : f32 to vector<48x224xf32>
    %69 = arith.cmpf oeq, %35, %68 : vector<48x224xf32>
    %cst_29 = arith.constant 0.000000e+00 : f32
    %70 = vector.broadcast %cst_29 : f32 to vector<48x224xf32>
    %71 = arith.select %69, %51, %70 : vector<48x224xi1>, vector<48x224xf32>
    %cst_30 = arith.constant dense<0.000000e+00> : vector<56x224xf32>
    %72 = tpu.matmul %25, %71, %cst_30 {dimension_numbers = #tpu.dot_dimension_numbers<[1], [0], [0], [1], [0, 0, 1, 1], [], []>} : vector<56x48xf32>, vector<48x224xf32>, vector<56x224xf32> -> vector<56x224xf32>
    %c2 = arith.constant 2 : index
    %c0_31 = arith.constant 0 : index
    %c0_32 = arith.constant 0 : index
    %73 = vector.load %arg2[%c2, %c0_31, %c0_32] : memref<3x56x224xf32, #tpu.memory_space<vmem>>, vector<1x56x224xf32>
    %74 = vector.shape_cast %73 : vector<1x56x224xf32> to vector<56x224xf32>
    %75 = vector.shape_cast %72 : vector<56x224xf32> to vector<1x56x224xf32>
    tpu.vector_store %arg2[%c2, %c0_31, %c0_32], %75 {strides = array<i32>} : memref<3x56x224xf32, #tpu.memory_space<vmem>>, vector<1x56x224xf32>,
    return
  }
  func.func @transform_0(%arg0: i32) -> (i32, i32) {
    %c0_i32 = arith.constant 0 : i32
    %c0_i32_0 = arith.constant 0 : i32
    %c0_i32_1 = arith.constant 0 : i32
    return %c0_i32, %c0_i32_0 : i32, i32
  }
  func.func @transform_1(%arg0: i32) -> (i32, i32, i32) {
    %c0_i32 = arith.constant 0 : i32
    %c0_i32_0 = arith.constant 0 : i32
    %c0_i32_1 = arith.constant 0 : i32
    return %c0_i32, %arg0, %c0_i32_0 : i32, i32, i32
  }
}

</mosaic_0001>

<bundles_post_ra>
// kernel: tpu_custom_call.1
= control target key start
LH: loop header
LB: loop body
LE: loop exit
PB: predicated region body
PF: predicated region fallthrough
CT: control target
= control target key end

     0   :  { %6 = vsyncpa [#allocation3], 0  ;;  %s1747_s0 = inlined_call_operand.hbm [shape: f32[16,48], index: 0, kind: input, shape index: {}]   ;;  %s1748_s1 = inlined_call_operand.hbm [shape: f32[3,224,224], index: 1, kind: output, shape index: {}]  }
   0x1   :  { %7 = vsyncpa [#allocation4], 0 }
   0x2   :  { %9 = vsyncpa [#allocation4 + $0x1], 0  ;;  %s1268_s6 = smov 0   ;;  %s1270_s7 = smov 0  }
   0x3   :  { %s1272_s8 = smov 0   ;;  %s1274_s9 = smov 0  }
   0x4 LB: > { %s1289_s10 = sadd.s32 4294967295, %s1244_s9   ;;  %s953_s11 = sadd.s32 4294967294, %s1244_s9   ;;  %s1244_s9 = sphi %s1274_s9, %s1756_s9   ;;  %s1240_s8 = sphi %s1272_s8, %s1755_s8   ;;  %s1236_s7 = sphi %s1270_s7, %s1754_s7   ;;  %s1232_s6 = sphi %s1268_s6, %s1753_s6  }
   0x5   : > { %s1293_s12 = sadd.s32 1, %s1244_s9   ;;  %s43_s13 = sadd.s32 1, %s1240_s8 }
   0x6   : > { %s40_s14 = ssub.s32 %s1244_s9, %s1293_s12  ;;  %p53_p0 = scmp.ne.s32.totalorder %s1240_s8, %s1236_s7 }
   0x7   : > { %p41_p1 = scmp.eq.s32.totalorder %s40_s14, 0  ;;  %p54_p2 = scmp.eq.s32.totalorder %s1289_s10, 3 }
   0x8   : > { %p59_p3 = scmp.ne.s32.totalorder %s1236_s7, %s1232_s6  ;;  %p60_p4 = scmp.eq.s32.totalorder %s953_s11, 3 }
   0x9   : > { %s1304_s15 = scalar_select %p41_p1, %s1240_s8, %s43_s13  }
   0xa   : > { %p1306_p5 = por %p54_p2, %p53_p0  ;;  %p1310_p6 = por %p60_p4, %p59_p3 }
   0xb   : > { %p954_p7 = scmp.ge.s32.totalorder %s1244_s9, 1  ;;  %p67_p8 = scmp.lt.s32.totalorder %s1244_s9, 5 }
   0xc   : > { %s1750_s17 = scalar_select %p1310_p6, 1, 0 }
   0xd   : > { %p1133_p9 = scmp.eq.s32.totalorder %s1289_s10, 0  ;;  %p1317_p10 = pnand %p954_p7, %p67_p8 }
   0xe   : > { %s1246_s19 = smov [#allocation2]  }
   0xf   : > { %s79_s20 = sshll.u32 %s1246_s19, 4  ;;  %p1125_p11 = pneg %p1317_p10  ;;  %s80_s20 = int_to_ptr.vmem [resolvable:$true] %s79_s20 }
  0x10   : > { %s1191_s21 = scalar_lea.vmem %s80_s20, 256  ;;  %p1199_p3 = scmp.lt.s32.totalorder %s80_s20, %s80_s20 }
  0x11   : > { %p1126_p12 = pnand %p1133_p9, %p1125_p11  ;;  %p1192_p0 = scmp.ne.s32.totalorder %s80_s20, %s1191_s21 }
  0x12   : > { %p1200_p4 = scmp.lt.s32.totalorder %s1191_s21, %s1191_s21 }
  0x13   : > { %p1182_p13 = pneg %p1126_p12 }
  0x14   : > { %p1201_p6 = por %p1200_p4, %p1199_p3 }
  0x15   : > { %p1194_p1 = pnand %p1192_p0, %p1182_p13 }
  0x17   : > { %p1195_p2 = pneg %p1194_p1 }
  0x19   : > { %p1202_p7 = pnand %p1201_p6, %p1195_p2 }
  0x1b   : > { %1205 = shalt.err (!%p1202_p7)
}
  0x1c   : > { %s1247_s22 = smov 128   ;;  %s1248_s23 = smov 8  }
  0x1d   : > { %1128 = dma.hbm_to_vmem [thread:$0]  (!%p1126_p12), %s1747_s0, 256, %s80_s20, [#allocation3], %s1247_s22, %s1247_s22, %s1248_s23  }
  0x1e   : > { %95 = sbr.rel (%p1317_p10) target bundleno = 508 (0x1fc), region = 24 }
  0x23   : > { %1223 = dma.done.wait (%p1133_p9), [#allocation3], 256  }
  0x24   : > { %1225 = vsyncadd (%p1133_p9), [#allocation3], 4294967040  ;;  %s111_s26 = smul.u32 56, %s1289_s10  ;;  %v113_v0 = vlaneseq  ;;  %v1249_v1 = vmov 0.0   ;;  %vm1250_vm0 = vmmov 0   ;;  %v203_v13 = vld [vmem:[#allocation2 + $0x8] sm:$0xff] }
  0x25   : > { %1075 = vmatprep.subr.mxu0 %v1249_v1  ;;  %1079 = vmatprep.mubr.msk.f32.mxu0 %vm1250_vm0, %v1249_v1  ;;  %v202_v14 = vld [vmem:[#allocation2] sm:$0xff]  ;;  %vm204_vm1 = vcmask 130048   ;;  %vm429_vm15 = vcmask 392192   ;;  %s107_s28 = sand.u32 1, %s1236_s7  }
  0x26   : > { %s112_s27 = scvt.s32.f32 %s111_s26  ;;  %v114_v2 = vshrl.u32 %v113_v0, 7  ;;  %515 = vmatprep.mubr.f32.mxu1 %v1249_v1  ;;  %1076 = vmatpush3.msra.mxu0 %v203_v13  ;;  %v137_v19 = vand.u32 127, %v113_v0  ;;  %s1112_s29 = smul.u32 336, %s107_s28 }
  0x27   : > { %1077 = vmatprep.subr.mxu0 %v1249_v1  ;;  %s854_s2 = scalar_lea.sflag [#allocation4], %s107_s28 }
  0x28   : > { %v1339_v3 = vcvt.s32.f32 %v114_v2  ;;  %v128_v4 = vstv %s112_s27  ;;  %v115_v5 = vadd.s32 8, %v114_v2  ;;  %v116_v6 = vadd.s32 16, %v114_v2  ;;  %1078 = vmatpush3.msra.mxu0 %v202_v14  ;;  %s1644_s30 = scalar_lea.vmem [#allocation5], %s1112_s29 }
  0x29   : > { %v117_v7 = vadd.s32 24, %v114_v2  ;;  %v118_v8 = vadd.s32 32, %v114_v2  ;;  %v119_v9 = vadd.s32 40, %v114_v2  ;;  %v120_v12 = vadd.s32 48, %v114_v2 }
  0x2a   : > { %v129_v10 = vadd.f32 %v128_v4, %v1339_v3  ;;  %v1342_v11 = vcvt.s32.f32 %v115_v5  ;;  %v1344_v15 = vcvt.s32.f32 %v116_v6  ;;  %v326_v30 = vadd.s32 128, %v137_v19 }
  0x2b   : > { %v1346_v16 = vcvt.s32.f32 %v117_v7  ;;  %v1348_v17 = vcvt.s32.f32 %v118_v8  ;;  %v1350_v18 = vcvt.s32.f32 %v119_v9  ;;  %v127_v22 = vcvt.s32.f32 %v120_v12 }
  0x2c   : > { %v139_v20 = vadd.f32 0.5, %v129_v10  ;;  %v130_v21 = vadd.f32 %v128_v4, %v1342_v11  ;;  %v131_v23 = vadd.f32 %v128_v4, %v1344_v15  ;;  %v138_v39 = vcvt.s32.f32 %v137_v19 }
  0x2d   : > { %v132_v24 = vadd.f32 %v128_v4, %v1346_v16  ;;  %v133_v25 = vadd.f32 %v128_v4, %v1348_v17  ;;  %v134_v26 = vadd.f32 %v128_v4, %v1350_v18  ;;  %v135_v29 = vadd.f32 %v128_v4, %v127_v22 }
  0x2e   : > { %v146_v27 = vmul.f32 0.071428575, %v139_v20  ;;  %v140_v28 = vadd.f32 0.5, %v130_v21  ;;  %v141_v31 = vadd.f32 0.5, %v131_v23  ;;  %v334_v38 = vmul.f32 0.33333334, %v1350_v18 }
  0x2f   : > { %v142_v32 = vadd.f32 0.5, %v132_v24  ;;  %v143_v33 = vadd.f32 0.5, %v133_v25  ;;  %v144_v34 = vadd.f32 0.5, %v134_v26  ;;  %v145_v37 = vadd.f32 0.5, %v135_v29 }
  0x30   : > { %v958_v35 = vadd.f32 -0.5, %v146_v27  ;;  %v147_v36 = vmul.f32 0.071428575, %v140_v28  ;;  %v148_v40 = vmul.f32 0.071428575, %v141_v31  ;;  %v327_v50 = vcvt.s32.f32 %v326_v30 }
  0x31   : > { %v149_v41 = vmul.f32 0.071428575, %v142_v32  ;;  %v150_v42 = vmul.f32 0.071428575, %v143_v33  ;;  %v151_v45 = vmul.f32 0.071428575, %v144_v34  ;;  %v1359_v58 = vfloor.f32 %v334_v38 }
  0x32   : > { %v160_v43 = vmax.f32 %v958_v35, 0.0  ;;  %v959_v44 = vadd.f32 -0.5, %v147_v36  ;;  %v152_v46 = vmul.f32 0.071428575, %v145_v37  ;;  %v960_v47 = vadd.f32 -0.5, %v148_v40 }
  0x33   : > { %v961_v48 = vadd.f32 -0.5, %v149_v41  ;;  %v962_v49 = vadd.f32 -0.5, %v150_v42  ;;  %v963_v53 = vadd.f32 -0.5, %v151_v45  ;;  %v354_v4 = vadd.f32 0.5, %v327_v50 }
  0x34   : > { %v167_v51 = vmin.f32 %v160_v43, 15.0  ;;  %v161_v52 = vmax.f32 %v959_v44, 0.0  ;;  %v964_v54 = vadd.f32 -0.5, %v152_v46  ;;  %v162_v55 = vmax.f32 %v960_v47, 0.0 }
  0x35   : > { %v163_v56 = vmax.f32 %v961_v48, 0.0  ;;  %v164_v57 = vmax.f32 %v962_v49, 0.0  ;;  %v165_v61 = vmax.f32 %v963_v53, 0.0  ;;  %v356_v13 = vmul.f32 0.071428575, %v354_v4 }
  0x36   : > { %v174_v59 = vsub.f32 %v167_v51, %v138_v39  ;;  %v168_v60 = vmin.f32 %v161_v52, 15.0  ;;  %v166_v62 = vmax.f32 %v964_v54, 0.0  ;;  %v169_v63 = vmin.f32 %v162_v55, 15.0 }
  0x37   : > { %v170_v0 = vmin.f32 %v163_v56, 15.0  ;;  %v171_v2 = vmin.f32 %v164_v57, 15.0  ;;  %v172_v7 = vmin.f32 %v165_v61, 15.0  ;;  %v346_v23 = vmul.f32 3.0, %v1359_v58 }
  0x38   : > { %v181_v5 = vand.u32 2147483647, %v174_v59  ;;  %v175_v6 = vsub.f32 %v168_v60, %v138_v39  ;;  %v173_v8 = vmin.f32 %v166_v62, 15.0  ;;  %v176_v9 = vsub.f32 %v169_v63, %v138_v39 }
  0x39   : > { %v177_v10 = vsub.f32 %v170_v0, %v138_v39  ;;  %v178_v12 = vsub.f32 %v171_v2, %v138_v39  ;;  %v179_v20 = vsub.f32 %v172_v7, %v138_v39  ;;  %v973_v29 = vadd.f32 -0.5, %v356_v13 }
  0x3a   : > { %v188_v14 = vsub.f32 1.0, %v181_v5  ;;  %v182_v19 = vand.u32 2147483647, %v175_v6  ;;  %v180_v21 = vsub.f32 %v173_v8, %v138_v39  ;;  %v183_v22 = vand.u32 2147483647, %v176_v9 }
  0x3b   : > { %v184_v26 = vand.u32 2147483647, %v177_v10  ;;  %v185_v27 = vand.u32 2147483647, %v178_v12  ;;  %v186_v28 = vand.u32 2147483647, %v179_v20  ;;  %v1366_v33 = vsub.f32 %v1350_v18, %v346_v23 }
  0x3c   : > { %v195_v24 = vmax.f32 %v188_v14, 0.0  ;;  %v189_v25 = vsub.f32 1.0, %v182_v19  ;;  %v190_v31 = vsub.f32 1.0, %v183_v22  ;;  %v187_v32 = vand.u32 2147483647, %v180_v21 }
  0x3d   : > { %v360_v34 = vmax.f32 %v973_v29, 0.0  ;;  %v191_v35 = vsub.f32 1.0, %v184_v26  ;;  %v192_v36 = vsub.f32 1.0, %v185_v27  ;;  %v353_v37 = vadd.f32 0.5, %v138_v39 }
  0x3e   : > { %1080 = vmatmul.mubr.msk.f32.vlgmr.msra.gmra.mxu0 %vm204_vm1, %v195_v24  ;;  %v196_v30 = vmax.f32 %v189_v25, 0.0  ;;  %v193_v38 = vsub.f32 1.0, %v186_v28  ;;  %v333_v41 = vmul.f32 0.33333334, %v1348_v17  ;;  %v332_v42 = vmul.f32 0.33333334, %v1346_v16 }
  0x3f   : > { %1082 = vmatprep.mubr.msk.f32.mxu0 %vm1250_vm0, %v1249_v1  ;;  %v1368_v40 = vmin.f32 %v360_v34, 15.0  ;;  %v197_v43 = vmax.f32 %v190_v31, 0.0  ;;  %v194_v44 = vsub.f32 1.0, %v187_v32  ;;  %v355_v45 = vmul.f32 0.071428575, %v353_v37 }
  0x40   : > { %v331_v46 = vmul.f32 0.33333334, %v1344_v15  ;;  %vm416_vm2 = vcmp.eq.f32.partialorder %v1366_v33, 0.0  ;;  %v339_v39 = vfloor.f32 %v333_v41  ;;  %v338_v47 = vfloor.f32 %v332_v42 }
  0x41   : > { %v374_v18 = vsub.f32 %v1368_v40, %v1359_v58  ;;  %v198_v48 = vmax.f32 %v191_v35, 0.0  ;;  %v199_v49 = vmax.f32 %v192_v36, 0.0  ;;  %v972_v50 = vadd.f32 -0.5, %v355_v45 }
  0x42   : > { %1083 = vmatmul.mubr.msk.f32.gmra.mxu0 %vm204_vm1, %v196_v30  ;;  %v337_v51 = vfloor.f32 %v331_v46  ;;  %v345_v53 = vmul.f32 3.0, %v339_v39  ;;  %v372_v54 = vsub.f32 %v1368_v40, %v339_v39  ;;  %v330_v55 = vmul.f32 0.33333334, %v1342_v11 }
  0x43   : > { %1085 = vmatprep.mubr.msk.f32.mxu0 %vm1250_vm0, %v1249_v1  ;;  %v386_v52 = vand.u32 2147483647, %v374_v18  ;;  %v359_v56 = vmax.f32 %v972_v50, 0.0  ;;  %v344_v57 = vmul.f32 3.0, %v338_v47  ;;  %v370_v59 = vsub.f32 %v1368_v40, %v338_v47 }
  0x44   : > { %v368_v60 = vsub.f32 %v1368_v40, %v337_v51  ;;  %v1387_v62 = vsub.f32 %v1348_v17, %v345_v53  ;;  %v384_v63 = vand.u32 2147483647, %v372_v54  ;;  %v343_v0 = vmul.f32 3.0, %v337_v51 }
  0x45   : > { %v398_v61 = vsub.f32 1.0, %v386_v52  ;;  %v200_v2 = vmax.f32 %v193_v38, 0.0  ;;  %v1389_v4 = vmax.f32 %v194_v44, 0.0  ;;  %v1391_v5 = vmin.f32 %v359_v56, 15.0 }
  0x46   : > { %1086 = vmatmul.mubr.msk.f32.gmra.mxu0 %vm204_vm1, %v197_v43  ;;  %v382_v6 = vand.u32 2147483647, %v370_v59  ;;  %vm578_vm3 = vcmp.eq.f32.partialorder %v1366_v33, 1.0  ;;  %v396_v8 = vsub.f32 1.0, %v384_v63  ;;  %v380_v9 = vand.u32 2147483647, %v368_v60 }
  0x47   : > { %1088 = vmatprep.mubr.msk.f32.mxu0 %vm1250_vm0, %v1249_v1  ;;  %v1393_v7 = vmax.f32 %v398_v61, 0.0  ;;  %v373_v17 = vsub.f32 %v1391_v5, %v1359_v58  ;;  %v371_v10 = vsub.f32 %v1391_v5, %v339_v39  ;;  %v336_v12 = vfloor.f32 %v330_v55 }
  0x48   : > { %v329_v13 = vmul.f32 0.33333334, %v1339_v3  ;;  %vm415_vm4 = vcmp.eq.f32.partialorder %v1387_v62, 0.0  ;;  %v1408_v14 = vsub.f32 %v1346_v16, %v344_v57  ;;  %v369_v19 = vsub.f32 %v1391_v5, %v338_v47 }
  0x49   : > { %974 = vmatprep.subr.msk.mxu1 %vm416_vm2, %v1393_v7  ;;  %v1412_v58 = vsub.f32 %v1344_v15, %v343_v0  ;;  %v385_v20 = vand.u32 2147483647, %v373_v17  ;;  %993 = vmatprep.subr.msk.mxu0 %vm578_vm3, %v1393_v7  ;;  %v383_v21 = vand.u32 2147483647, %v371_v10  ;;  %vm577_vm5 = vcmp.eq.f32.partialorder %v1387_v62, 1.0 }
  0x4a   : > { %1089 = vmatmul.mubr.msk.f32.gmra.mxu0 %vm204_vm1, %v198_v48  ;;  %v394_v22 = vsub.f32 1.0, %v382_v6  ;;  %v1418_v23 = vmax.f32 %v396_v8, 0.0  ;;  %v381_v24 = vand.u32 2147483647, %v369_v19  ;;  %v392_v25 = vsub.f32 1.0, %v380_v9 }
  0x4b   : > { %1091 = vmatprep.mubr.msk.f32.mxu0 %vm1250_vm0, %v1249_v1  ;;  %v367_v16 = vsub.f32 %v1391_v5, %v337_v51  ;;  %v397_v26 = vsub.f32 1.0, %v385_v20  ;;  %v395_v15 = vsub.f32 1.0, %v383_v21  ;;  %v342_v27 = vmul.f32 3.0, %v336_v12 }
  0x4c   : > { %v366_v28 = vsub.f32 %v1368_v40, %v336_v12  ;;  %v393_v29 = vsub.f32 1.0, %v381_v24  ;;  %v365_v31 = vsub.f32 %v1391_v5, %v336_v12  ;;  %v335_v32 = vfloor.f32 %v329_v13 }
  0x4d   : > { %v379_v30 = vand.u32 2147483647, %v367_v16  ;;  %v1426_v34 = vmax.f32 %v397_v26, 0.0  ;;  %v1428_v35 = vmax.f32 %v395_v15, 0.0  ;;  %vm414_vm6 = vcmp.eq.f32.partialorder %v1408_v14, 0.0 }
  0x4e   : > { %1092 = vmatmul.mubr.msk.f32.gmra.mxu0 %vm204_vm1, %v199_v49  ;;  %v378_v36 = vand.u32 2147483647, %v366_v28  ;;  %v1431_v37 = vmax.f32 %v394_v22, 0.0  ;;  %v377_v41 = vand.u32 2147483647, %v365_v31  ;;  %v341_v42 = vmul.f32 3.0, %v335_v32 }
  0x4f   : > { %1094 = vmatprep.mubr.msk.f32.mxu0 %vm1250_vm0, %v1249_v1  ;;  %v391_v38 = vsub.f32 1.0, %v379_v30  ;;  %975 = vmatpush1.msk.msra.mxu1 %vm416_vm2, %v1426_v34  ;;  %v1437_v43 = vmax.f32 %v393_v29, 0.0  ;;  %v1440_v44 = vsub.f32 %v1342_v11, %v342_v27  ;;  %v364_v46 = vsub.f32 %v1368_v40, %v335_v32 }
  0x50   : > { %v390_v45 = vsub.f32 1.0, %v378_v36  ;;  %976 = vmatprep.subr.msk.mxu1 %vm415_vm4, %v1418_v23  ;;  %v1448_v18 = vmax.f32 %v392_v25, 0.0  ;;  %v389_v39 = vsub.f32 1.0, %v377_v41  ;;  %v363_v47 = vsub.f32 %v1391_v5, %v335_v32  ;;  %994 = vmatpush1.msk.msra.mxu0 %vm578_vm3, %v1426_v34 }
  0x51   : > { %977 = vmatpush1.msk.msra.mxu1 %vm415_vm4, %v1428_v35  ;;  %vm413_vm7 = vcmp.eq.f32.partialorder %v1412_v58, 0.0  ;;  %v1458_v11 = vmax.f32 %v391_v38, 0.0  ;;  %v1461_v40 = vsub.f32 %v1339_v3, %v341_v42  ;;  %v376_v48 = vand.u32 2147483647, %v364_v46  ;;  %995 = vmatprep.subr.msk.mxu0 %vm577_vm5, %v1418_v23 }
  0x52   : > { %1095 = vmatmul.mubr.msk.f32.gmra.mxu0 %vm204_vm1, %v200_v2  ;;  %978 = vmatprep.subr.msk.mxu1 %vm414_vm6, %v1431_v37  ;;  %vm576_vm8 = vcmp.eq.f32.partialorder %v1408_v14, 1.0  ;;  %v1470_v49 = vmax.f32 %v390_v45, 0.0  ;;  %v375_v50 = vand.u32 2147483647, %v363_v47  ;;  %vm412_vm9 = vcmp.eq.f32.partialorder %v1440_v44, 0.0 }
  0x53   : > { %1097 = vmatprep.mubr.msk.f32.mxu0 %vm1250_vm0, %v1249_v1  ;;  %979 = vmatpush1.msk.msra.mxu1 %vm414_vm6, %v1437_v43  ;;  %v1478_v3 = vmax.f32 %v389_v39, 0.0  ;;  %v388_v51 = vsub.f32 1.0, %v376_v48  ;;  %vm575_vm10 = vcmp.eq.f32.partialorder %v1412_v58, 1.0  ;;  %vm411_vm11 = vcmp.eq.f32.partialorder %v1461_v40, 0.0 }
  0x54   : > { %996 = vmatpush1.msk.msra.mxu0 %vm577_vm5, %v1428_v35  ;;  %980 = vmatprep.subr.msk.mxu1 %vm413_vm7, %v1448_v18  ;;  %v387_v52 = vsub.f32 1.0, %v375_v50  ;;  %vm574_vm12 = vcmp.eq.f32.partialorder %v1440_v44, 1.0  ;;  %vm573_vm13 = vcmp.eq.f32.partialorder %v1461_v40, 1.0  ;;  %vm718_vm14 = vcmp.eq.f32.partialorder %v1366_v33, 2.0 }
  0x55   : > { %997 = vmatprep.subr.msk.mxu0 %vm576_vm8, %v1431_v37  ;;  %981 = vmatpush1.msk.msra.mxu1 %vm413_vm7, %v1458_v11  ;;  %v1493_v53 = vmax.f32 %v388_v51, 0.0  ;;  %vm717_vm0 = vcmp.eq.f32.partialorder %v1387_v62, 2.0  ;;  %vm715_vm2 = vcmp.eq.f32.partialorder %v1412_v58, 2.0  ;;  %vm714_vm3 = vcmp.eq.f32.partialorder %v1440_v44, 2.0 }
  0x56   : > { %1098 = vmatmul.mubr.msk.f32.gmra.mxu0 %vm204_vm1, %v1389_v4  ;;  %982 = vmatprep.subr.msk.mxu1 %vm412_vm9, %v1470_v49  ;;  %v1503_v54 = vmax.f32 %v387_v52, 0.0  ;;  %vm716_vm1 = vcmp.eq.f32.partialorder %v1408_v14, 2.0  ;;  %vm713_vm4 = vcmp.eq.f32.partialorder %v1461_v40, 2.0  ;;  %vm559_vm5 = vcmask 785408  }
  0x57   : > { %998 = vmatpush1.msk.msra.mxu0 %vm576_vm8, %v1437_v43  ;;  %983 = vmatpush1.msk.msra.mxu1 %vm412_vm9, %v1478_v3 }
  0x58   : > { %999 = vmatprep.subr.msk.mxu0 %vm575_vm10, %v1448_v18  ;;  %984 = vmatprep.subr.msk.mxu1 %vm411_vm11, %v1493_v53 }
  0x59   : > { %1000 = vmatpush1.msk.msra.mxu0 %vm575_vm10, %v1458_v11  ;;  %985 = vmatpush1.msk.msra.mxu1 %vm411_vm11, %v1503_v54 }
  0x5a   : > { %1001 = vmatprep.subr.msk.mxu0 %vm574_vm12, %v1470_v49  ;;  %655 = vmatprep.mubr.f32.mxu0 %v1249_v1 }
  0x5b   : > { %1002 = vmatpush1.msk.msra.mxu0 %vm574_vm12, %v1478_v3  ;;  %1100 = vmatprep.subr.msk.mxu1 %vm718_vm14, %v1393_v7 }
  0x5c   : > { %1003 = vmatprep.subr.msk.mxu0 %vm573_vm13, %v1493_v53 }
  0x5d   : > { %1004 = vmatpush1.msk.msra.mxu0 %vm573_vm13, %v1503_v54 }
  0x5e   : > { %1026 = vmatprep.subr.msk.mxu0 %vm718_vm14, %v1393_v7 }
  0xfe   : > { %v1525_v55 = vpop.f32.mrf.mxu0 }
  0xff   : > { %986 = vmatmul.mubr.msk.f32.vlgmr.msra.gmra.mxu1 %vm429_vm15, %v1525_v55  ;;  %1005 = vmatmul.mubr.msk.f32.vlgmr.msra.gmra.mxu0 %vm429_vm15, %v1525_v55 }
 0x100   : > { %1106 = vmatpush1.msk.msra.mxu1 %vm718_vm14, %v1426_v34  ;;  %v1081_v56 = vpop.f32.mrf.mxu0  ;;  %521 = vmatprep.mubr.f32.mxu1 %v1249_v1 }
 0x101   : > { %661 = vmatprep.mubr.f32.mxu0 %v1249_v1  ;;  %1101 = vmatprep.subr.msk.mxu1 %vm717_vm0, %v1418_v23 }
 0x102   : > { %v297_v57 = vpop.f32.mrf.mxu0  ;;  %1107 = vmatpush1.msk.msra.mxu1 %vm717_vm0, %v1428_v35  ;;  %1027 = vmatpush1.msk.msra.mxu0 %vm718_vm14, %v1426_v34 }
 0x103   : > { %987 = vmatmul.mubr.msk.f32.gmra.mxu1 %vm429_vm15, %v297_v57  ;;  %1006 = vmatmul.mubr.msk.f32.gmra.mxu0 %vm429_vm15, %v297_v57 }
 0x104   : > { %v1084_v59 = vpop.f32.mrf.mxu0  ;;  %527 = vmatprep.mubr.f32.mxu1 %v1249_v1  ;;  %667 = vmatprep.mubr.f32.mxu0 %v1249_v1 }
 0x105   : > { %1102 = vmatprep.subr.msk.mxu1 %vm716_vm1, %v1431_v37  ;;  %1028 = vmatprep.subr.msk.mxu0 %vm717_vm0, %v1418_v23 }
 0x106   : > { %v302_v60 = vpop.f32.mrf.mxu0  ;;  %1108 = vmatpush1.msk.msra.mxu1 %vm716_vm1, %v1437_v43  ;;  %1029 = vmatpush1.msk.msra.mxu0 %vm717_vm0, %v1428_v35 }
 0x107   : > { %988 = vmatmul.mubr.msk.f32.gmra.mxu1 %vm429_vm15, %v302_v60  ;;  %1007 = vmatmul.mubr.msk.f32.gmra.mxu0 %vm429_vm15, %v302_v60 }
 0x108   : > { %v1087_v33 = vpop.f32.mrf.mxu0  ;;  %533 = vmatprep.mubr.f32.mxu1 %v1249_v1  ;;  %673 = vmatprep.mubr.f32.mxu0 %v1249_v1 }
 0x109   : > { %1103 = vmatprep.subr.msk.mxu1 %vm715_vm2, %v1448_v18  ;;  %1030 = vmatprep.subr.msk.mxu0 %vm716_vm1, %v1431_v37 }
 0x10a   : > { %v307_v61 = vpop.f32.mrf.mxu0  ;;  %1109 = vmatpush1.msk.msra.mxu1 %vm715_vm2, %v1458_v11  ;;  %1031 = vmatpush1.msk.msra.mxu0 %vm716_vm1, %v1437_v43 }
 0x10b   : > { %989 = vmatmul.mubr.msk.f32.gmra.mxu1 %vm429_vm15, %v307_v61  ;;  %1008 = vmatmul.mubr.msk.f32.gmra.mxu0 %vm429_vm15, %v307_v61 }
 0x10c   : > { %v1090_v62 = vpop.f32.mrf.mxu0  ;;  %539 = vmatprep.mubr.f32.mxu1 %v1249_v1  ;;  %679 = vmatprep.mubr.f32.mxu0 %v1249_v1 }
 0x10d   : > { %1104 = vmatprep.subr.msk.mxu1 %vm714_vm3, %v1470_v49  ;;  %1032 = vmatprep.subr.msk.mxu0 %vm715_vm2, %v1448_v18 }
 0x10e   : > { %v312_v63 = vpop.f32.mrf.mxu0  ;;  %1110 = vmatpush1.msk.msra.mxu1 %vm714_vm3, %v1478_v3  ;;  %1033 = vmatpush1.msk.msra.mxu0 %vm715_vm2, %v1458_v11 }
 0x10f   : > { %990 = vmatmul.mubr.msk.f32.gmra.mxu1 %vm429_vm15, %v312_v63  ;;  %1009 = vmatmul.mubr.msk.f32.gmra.mxu0 %vm429_vm15, %v312_v63 }
 0x110   : > { %v1093_v0 = vpop.f32.mrf.mxu0  ;;  %545 = vmatprep.mubr.f32.mxu1 %v1249_v1  ;;  %685 = vmatprep.mubr.f32.mxu0 %v1249_v1 }
 0x111   : > { %1105 = vmatprep.subr.msk.mxu1 %vm713_vm4, %v1493_v53  ;;  %1034 = vmatprep.subr.msk.mxu0 %vm714_vm3, %v1470_v49 }
 0x112   : > { %v317_v2 = vpop.f32.mrf.mxu0  ;;  %1111 = vmatpush1.msk.msra.mxu1 %vm713_vm4, %v1503_v54  ;;  %1035 = vmatpush1.msk.msra.mxu0 %vm714_vm3, %v1478_v3 }
 0x113   : > { %991 = vmatmul.mubr.msk.f32.gmra.mxu1 %vm429_vm15, %v317_v2  ;;  %1010 = vmatmul.mubr.msk.f32.gmra.mxu0 %vm429_vm15, %v317_v2 }
 0x114   : > { %v1096_v4 = vpop.f32.mrf.mxu0  ;;  %551 = vmatprep.mubr.f32.mxu1 %v1249_v1  ;;  %691 = vmatprep.mubr.f32.mxu0 %v1249_v1 }
 0x115   : > { %1036 = vmatprep.subr.msk.mxu0 %vm713_vm4, %v1493_v53 }
 0x116   : > { %v322_v5 = vpop.f32.mrf.mxu0  ;;  %1037 = vmatpush1.msk.msra.mxu0 %vm713_vm4, %v1503_v54 }
 0x117   : > { %992 = vmatmul.mubr.msk.f32.gmra.mxu1 %vm429_vm15, %v322_v5  ;;  %1011 = vmatmul.mubr.msk.f32.gmra.mxu0 %vm429_vm15, %v322_v5 }
 0x118   : > { %v1099_v6 = vpop.f32.mrf.mxu0  ;;  %795 = vmatprep.mubr.f32.mxu0 %v1249_v1  ;;  %801 = vmatprep.mubr.f32.mxu1 %v1249_v1 }
 0x11b   : > { %1038 = vmatmul.mubr.msk.f32.vlgmr.msra.gmra.mxu0 %vm429_vm15, %v1525_v55  ;;  %1039 = vmatmul.mubr.msk.f32.vlgmr.msra.gmra.mxu1 %vm429_vm15, %v297_v57 }
 0x11c   : > { %807 = vmatprep.mubr.f32.mxu1 %v1249_v1 }
 0x11f   : > { %1040 = vmatmul.mubr.msk.f32.gmra.mxu1 %vm429_vm15, %v302_v60 }
 0x120   : > { %813 = vmatprep.mubr.f32.mxu1 %v1249_v1 }
 0x123   : > { %1041 = vmatmul.mubr.msk.f32.gmra.mxu1 %vm429_vm15, %v307_v61 }
 0x124   : > { %819 = vmatprep.mubr.f32.mxu1 %v1249_v1 }
 0x127   : > { %1042 = vmatmul.mubr.msk.f32.gmra.mxu1 %vm429_vm15, %v312_v63 }
 0x128   : > { %825 = vmatprep.mubr.f32.mxu1 %v1249_v1 }
 0x12b   : > { %1043 = vmatmul.mubr.msk.f32.gmra.mxu1 %vm429_vm15, %v317_v2 }
 0x12c   : > { %831 = vmatprep.mubr.f32.mxu1 %v1249_v1 }
 0x12f   : > { %1044 = vmatmul.mubr.msk.f32.gmra.mxu1 %vm429_vm15, %v322_v5 }
 0x1bf   : > { %v517_v7 = vpop.f32.mrf.mxu1  ;;  %v657_v8 = vpop.f32.mrf.mxu0 }
 0x1c0   : > { %558 = vst [vmem:[%s1644_s30] sm:$0xff] %v517_v7  ;;  %1012 = vst [vmem:[%s1644_s30 + $0x70] sm:$0xff] %v657_v8 }
 0x1c1   : > { %v519_v1 = vpop.f32.mrf.mxu1  ;;  %v659_v9 = vpop.f32.mrf.mxu0 }
 0x1c2   : > { %560 = vst.msk [vmem:[%s1644_s30 + $0x8] sm:$0xff] %vm559_vm5, %v519_v1  ;;  %1013 = vst.msk [vmem:[%s1644_s30 + $0x78] sm:$0xff] %vm559_vm5, %v659_v9 }
 0x1c3   : > { %v523_v17 = vpop.f32.mrf.mxu1  ;;  %v663_v10 = vpop.f32.mrf.mxu0 }
 0x1c4   : > { %561 = vst [vmem:[%s1644_s30 + $0x10] sm:$0xff] %v523_v17  ;;  %1014 = vst [vmem:[%s1644_s30 + $0x80] sm:$0xff] %v663_v10 }
 0x1c5   : > { %v525_v12 = vpop.f32.mrf.mxu1  ;;  %v665_v13 = vpop.f32.mrf.mxu0 }
 0x1c6   : > { %562 = vst.msk [vmem:[%s1644_s30 + $0x18] sm:$0xff] %vm559_vm5, %v525_v12  ;;  %1015 = vst.msk [vmem:[%s1644_s30 + $0x88] sm:$0xff] %vm559_vm5, %v665_v13 }
 0x1c7   : > { %v529_v14 = vpop.f32.mrf.mxu1  ;;  %v669_v19 = vpop.f32.mrf.mxu0 }
 0x1c8   : > { %563 = vst [vmem:[%s1644_s30 + $0x20] sm:$0xff] %v529_v14  ;;  %1016 = vst [vmem:[%s1644_s30 + $0x90] sm:$0xff] %v669_v19 }
 0x1c9   : > { %v531_v58 = vpop.f32.mrf.mxu1  ;;  %v671_v20 = vpop.f32.mrf.mxu0 }
 0x1ca   : > { %564 = vst.msk [vmem:[%s1644_s30 + $0x28] sm:$0xff] %vm559_vm5, %v531_v58  ;;  %1017 = vst.msk [vmem:[%s1644_s30 + $0x98] sm:$0xff] %vm559_vm5, %v671_v20 }
 0x1cb   : > { %v535_v21 = vpop.f32.mrf.mxu1  ;;  %v675_v22 = vpop.f32.mrf.mxu0 }
 0x1cc   : > { %565 = vst [vmem:[%s1644_s30 + $0x30] sm:$0xff] %v535_v21  ;;  %1018 = vst [vmem:[%s1644_s30 + $0xa0] sm:$0xff] %v675_v22 }
 0x1cd   : > { %v537_v23 = vpop.f32.mrf.mxu1  ;;  %v677_v24 = vpop.f32.mrf.mxu0 }
 0x1ce   : > { %566 = vst.msk [vmem:[%s1644_s30 + $0x38] sm:$0xff] %vm559_vm5, %v537_v23  ;;  %1019 = vst.msk [vmem:[%s1644_s30 + $0xa8] sm:$0xff] %vm559_vm5, %v677_v24 }
 0x1cf   : > { %v541_v25 = vpop.f32.mrf.mxu1  ;;  %v681_v16 = vpop.f32.mrf.mxu0 }
 0x1d0   : > { %567 = vst [vmem:[%s1644_s30 + $0x40] sm:$0xff] %v541_v25  ;;  %1020 = vst [vmem:[%s1644_s30 + $0xb0] sm:$0xff] %v681_v16 }
 0x1d1   : > { %v543_v26 = vpop.f32.mrf.mxu1  ;;  %v683_v15 = vpop.f32.mrf.mxu0 }
 0x1d2   : > { %568 = vst.msk [vmem:[%s1644_s30 + $0x48] sm:$0xff] %vm559_vm5, %v543_v26  ;;  %1021 = vst.msk [vmem:[%s1644_s30 + $0xb8] sm:$0xff] %vm559_vm5, %v683_v15 }
 0x1d3   : > { %v547_v27 = vpop.f32.mrf.mxu1  ;;  %v687_v28 = vpop.f32.mrf.mxu0 }
 0x1d4   : > { %569 = vst [vmem:[%s1644_s30 + $0x50] sm:$0xff] %v547_v27  ;;  %1022 = vst [vmem:[%s1644_s30 + $0xc0] sm:$0xff] %v687_v28 }
 0x1d5   : > { %v549_v29 = vpop.f32.mrf.mxu1  ;;  %v689_v30 = vpop.f32.mrf.mxu0 }
 0x1d6   : > { %570 = vst.msk [vmem:[%s1644_s30 + $0x58] sm:$0xff] %vm559_vm5, %v549_v29  ;;  %1023 = vst.msk [vmem:[%s1644_s30 + $0xc8] sm:$0xff] %vm559_vm5, %v689_v30 }
 0x1d7   : > { %v553_v31 = vpop.f32.mrf.mxu1  ;;  %v693_v32 = vpop.f32.mrf.mxu0 }
 0x1d8   : > { %571 = vst [vmem:[%s1644_s30 + $0x60] sm:$0xff] %v553_v31  ;;  %1024 = vst [vmem:[%s1644_s30 + $0xd0] sm:$0xff] %v693_v32 }
 0x1d9   : > { %v555_v34 = vpop.f32.mrf.mxu1  ;;  %v695_v35 = vpop.f32.mrf.mxu0 }
 0x1da   : > { %572 = vst.msk [vmem:[%s1644_s30 + $0x68] sm:$0xff] %vm559_vm5, %v555_v34  ;;  %1025 = vst.msk [vmem:[%s1644_s30 + $0xd8] sm:$0xff] %vm559_vm5, %v695_v35 }
 0x1db   : > { %v797_v36 = vpop.f32.mrf.mxu0  ;;  %v803_v37 = vpop.f32.mrf.mxu1 }
 0x1dc   : > { %1045 = vst [vmem:[%s1644_s30 + $0xe0] sm:$0xff] %v797_v36  ;;  %1047 = vst [vmem:[%s1644_s30 + $0xf0] sm:$0xff] %v803_v37 }
 0x1dd   : > { %v799_v38 = vpop.f32.mrf.mxu0  ;;  %v805_v41 = vpop.f32.mrf.mxu1 }
 0x1de   : > { %1046 = vst.msk [vmem:[%s1644_s30 + $0xe8] sm:$0xff] %vm559_vm5, %v799_v38  ;;  %1048 = vst.msk [vmem:[%s1644_s30 + $0xf8] sm:$0xff] %vm559_vm5, %v805_v41 }
 0x1df   : > { %v809_v42 = vpop.f32.mrf.mxu1 }
 0x1e0   : > { %1049 = vst [vmem:[%s1644_s30 + $0x100] sm:$0xff] %v809_v42 }
 0x1e1   : > { %v811_v43 = vpop.f32.mrf.mxu1 }
 0x1e2   : > { %1050 = vst.msk [vmem:[%s1644_s30 + $0x108] sm:$0xff] %vm559_vm5, %v811_v43 }
 0x1e3   : > { %v815_v44 = vpop.f32.mrf.mxu1 }
 0x1e4   : > { %1051 = vst [vmem:[%s1644_s30 + $0x110] sm:$0xff] %v815_v44 }
 0x1e5   : > { %v817_v45 = vpop.f32.mrf.mxu1 }
 0x1e6   : > { %1052 = vst.msk [vmem:[%s1644_s30 + $0x118] sm:$0xff] %vm559_vm5, %v817_v45 }
 0x1e7   : > { %v821_v46 = vpop.f32.mrf.mxu1 }
 0x1e8   : > { %1053 = vst [vmem:[%s1644_s30 + $0x120] sm:$0xff] %v821_v46 }
 0x1e9   : > { %v823_v18 = vpop.f32.mrf.mxu1 }
 0x1ea   : > { %1054 = vst.msk [vmem:[%s1644_s30 + $0x128] sm:$0xff] %vm559_vm5, %v823_v18 }
 0x1eb   : > { %v827_v39 = vpop.f32.mrf.mxu1 }
 0x1ec   : > { %1055 = vst [vmem:[%s1644_s30 + $0x130] sm:$0xff] %v827_v39 }
 0x1ed   : > { %v829_v47 = vpop.f32.mrf.mxu1 }
 0x1ee   : > { %1056 = vst.msk [vmem:[%s1644_s30 + $0x138] sm:$0xff] %vm559_vm5, %v829_v47 }
 0x1ef   : > { %v833_v11 = vpop.f32.mrf.mxu1 }
 0x1f0   : > { %1057 = vst [vmem:[%s1644_s30 + $0x140] sm:$0xff] %v833_v11 }
 0x1f1   : > { %v835_v40 = vpop.f32.mrf.mxu1 }
 0x1f2   : > { %1058 = vst.msk [vmem:[%s1644_s30 + $0x148] sm:$0xff] %vm559_vm5, %v835_v40 }
 0x1f3   : > { %s1065_s3 = smul.u32 1792, %s1289_s10  ;;  %s878_s4 = sshll.u32 %s1644_s30, 4  ;;  %s879_s4 = int_to_ptr.vmem [resolvable:$true] %s878_s4 }
 0x1f4   : > { %s1251_s14 = smov 1792   ;;  %s1252_s18 = smov 7168  }
 0x1f5   : > { %s867_s13 = scalar_lea.hbm %s1748_s1, %s1065_s3  ;;  %1117 = sst [smem:[#allocation7]] (%p1306_p5), %s1251_s14 }
 0x1f6   : > { %1118 = sst [smem:[#allocation7 + $0x1]] (%p1306_p5), %s1252_s18  ;;  %s1253_s19 = smov 7  }
 0x1f7   : > { %1119 = sst [smem:[#allocation7 + $0x2]] (%p1306_p5), %s1253_s19  ;;  %s1254_s20 = smov 256  }
 0x1f8   : > { %1120 = sst [smem:[#allocation7 + $0x3]] (%p1306_p5), %s1254_s20  ;;  %s1255_s10 = smov 16  }
 0x1f9   : > { %1121 = sst [smem:[#allocation7 + $0x4]] (%p1306_p5), %s1254_s20  ;;  %s1256_s21 = smov 131072  }
 0x1fa   : > { %1122 = sst [smem:[#allocation7 + $0x5]] (%p1306_p5), %s1255_s10  ;;  %s1257_s22 = smov 0  }
 0x1fb   : > { %1123 = dma.general (%p1306_p5), %s879_s4, 5376, %s867_s13, %s854_s2, %s1256_s21, [#allocation7], %s1257_s22, 0  }
 0x1fc PF: > { %p1135_p6 = scmp.ge.s32.totalorder %s1244_s9, 2  ;;  %s906_s23 = sand.u32 1, %s1232_s6  }
 0x1fd   : > { %p1752_p8 = scmp.ne.s32.totalorder %s1750_s17, 0  ;;  %s907_s24 = scalar_lea.sflag [#allocation4], %s906_s23 }
 0x1ff   : > { %p1130_p9 = pnand %p1135_p6, %p1752_p8 }
 0x201   : > { %p1131_p10 = pneg %p1130_p9 }
 0x203   : > { %1227 = dma.done.wait (%p1131_p10), %s907_s24, 5376  }
 0x204   : > { %1229 = vsyncadd (%p1131_p10), %s907_s24, 4294961920  ;;  %p12_p11 = scmp.ge.s32.totalorder %s1293_s12, 6   ;;  %s1753_s6 = smov %s1236_s7 }
 0x205   : > { %s1754_s7 = smov %s1240_s8  ;;  %s1755_s8 = smov %s1304_s15 }
 0x206   : > { %s1756_s9 = smov %s1293_s12  ;;  %14 = sbr.rel (!%p12_p11) target bundleno = 4 (0x4), region = 68 }
 0x20b   :  { %912 = vsyncpa [#allocation3], 1 }
 0x20c   :  { %914 = vsyncpa [#allocation3 + $0x1], 1 }
 0x20d   :  { %915 = vsyncpa [#allocation4], 1 }
 0x20e   :  { %917 = vsyncpa [#allocation4 + $0x1], 1 }

</bundles_post_ra>
